<compile_context>
chip_gen: v7x
topology: tpu7x:2x2x1
jax: 0.10.0
libtpu: 0.0.40
codegen_flags: <defaults>
</compile_context>

<pallas_src>
import jax
import jax.numpy as jnp
from jax.experimental import pallas as pl
from jax.experimental.pallas import tpu as pltpu


# ----------------------------- helpers ----------------------------------------
def _round_up(x, m):
    return (x + m - 1) // m * m


_VMEM_TILE_BUDGET = 20 * 1024 * 1024   # double-buffered tile budget (v7x-safe)
_VMEM_LIMIT_BYTES = 48 * 1024 * 1024   # explicit scoped-VMEM limit with headroom


def _choose_tiles(M, V, D):
    """Pick (TM, TN) minimizing row-padding waste and fitting the VMEM budget."""
    # Row tile: single block for small/decode-sized M, else least-waste choice.
    M_pad8 = _round_up(max(M, 1), 8)
    if M_pad8 <= 512:
        TM = M_pad8
    else:
        cands = (512, 256, 128, 64)
        TM = min(cands, key=lambda t: (_round_up(M, t) - M, -t))

    # Vocab tile: lane-dense and as large as the budget allows.
    TN = min(_round_up(V, 128), 2048)

    def tile_bytes(tm, tn):
        # double-buffered bf16 x + bf16 w + f32 out tiles
        return 2 * (tm * D * 2 + D * tn * 2 + tm * tn * 4)

    while tile_bytes(TM, TN) > _VMEM_TILE_BUDGET and TN > 256:
        TN = max(256, TN // 2)
    while tile_bytes(TM, TN) > _VMEM_TILE_BUDGET and TM > 64:
        TM = max(64, TM // 2)
    return TM, TN


# ----------------------------- kernel ------------------------------------------
def lm_head_kernel(x_ref, w_ref, o_ref):
    # x_ref : [TM, D]   bf16 rows of the flattened (B*T) decoder output
    # w_ref : [D, TN]   bf16 lane-dense slice of the prepared lm_head weight
    # o_ref : [TM, TN]  f32 lane-dense logits tile (full-width vst)
    o_ref[...] = jnp.dot(
        x_ref[...], w_ref[...], preferred_element_type=jnp.float32
    ).astype(o_ref.dtype)


# ----------------------------- weight prep (one-time) ---------------------------
def prepare_t5_lm_head_weight(lm_head_weight, tn):
    """One-time preprocessing (NOT per forward): [V, D] -> bf16 [D, V_pad].

    Presents the weight lane-dense (vocab on the lane axis) and padded to a
    multiple of the vocab tile, so the forward never transposes or pads it.
    """
    V, D = lm_head_weight.shape
    V_pad = _round_up(V, tn)
    w = lm_head_weight.astype(jnp.bfloat16).T          # [D, V], vocab lane-dense
    if V_pad != V:
        w = jnp.pad(w, ((0, 0), (0, V_pad - V)))
    return w                                            # [D, V_pad] bf16


# ----------------------------- forward ------------------------------------------
def t5_lm_head_forward(w_prepared, vocab_size, decoder_output, *, tm, tn):
    """Mirrors T5LMHead.forward: logits = decoder_output @ lm_head.weight.T.

    w_prepared     : [D, V_pad] bf16 from prepare_t5_lm_head_weight (V_pad % tn == 0)
    decoder_output : [B, T, D]
    returns        : [B, T, vocab_size] float32 logits
    (T5's lm_head is nn.Linear(d_model, vocab, bias=False) -> no bias add.)
    """
    B, T, D = decoder_output.shape
    Dw, V_pad = w_prepared.shape
    assert Dw == D and V_pad % tn == 0

    M = B * T
    M_pad = _round_up(M, tm)

    # Flatten batch*time onto dense sublane rows; bf16 operand stream.
    x = decoder_output.reshape(M, D).astype(jnp.bfloat16)
    if M_pad != M:
        x = jnp.pad(x, ((0, M_pad - M), (0, 0)))

    # Vocab OUTER, rows INNER: the weight block index depends only on the outer
    # axis, so each [D, tn] weight tile is fetched from HBM exactly once and
    # stays resident across the inner row steps.
    grid = (V_pad // tn, M_pad // tm)

    logits_flat = pl.pallas_call(
        lm_head_kernel,
        out_shape=jax.ShapeDtypeStruct((M_pad, V_pad), jnp.float32),
        grid=grid,
        in_specs=[
            pl.BlockSpec((tm, D), lambda j, i: (i, 0)),   # activations (small, re-streamed)
            pl.BlockSpec((D, tn), lambda j, i: (0, j)),   # weight slice (resident per j)
        ],
        out_specs=pl.BlockSpec((tm, tn), lambda j, i: (i, j)),
        compiler_params=pltpu.CompilerParams(
            # Both axes independent -> shardable across v7x's 2 TensorCores;
            # the outer vocab axis always has >1 blocks of work for real vocabs.
            dimension_semantics=("parallel", "parallel"),
            vmem_limit_bytes=_VMEM_LIMIT_BYTES,
        ),
    )(x, w_prepared)

    # Strip padding and restore [B, T, V].
    return logits_flat[:M, :vocab_size].reshape(B, T, vocab_size)


# ----------------------------- main ---------------------------------------------
if __name__ == "__main__":
    B, T, D_MODEL, VOCAB = 2, 8, 32, 256

    key = jax.random.PRNGKey(0)
    k_x, k_w = jax.random.split(key, 2)

    decoder_output = jax.random.normal(k_x, (B, T, D_MODEL), jnp.float32)
    lm_head_weight = jax.random.normal(k_w, (VOCAB, D_MODEL), jnp.float32) * 0.05

    TM, TN = _choose_tiles(B * T, VOCAB, D_MODEL)

    # One-time weight prep, hoisted out of the per-call hot path.
    w_prepared = prepare_t5_lm_head_weight(lm_head_weight, TN)

    logits = t5_lm_head_forward(w_prepared, VOCAB, decoder_output, tm=TM, tn=TN)
    jax.block_until_ready(logits)

    assert logits.shape == (B, T, VOCAB)

    # Reference: plain-JAX equivalent of the PyTorch module (f32).  Tolerance is
    # loosened relative to the pure-f32 path because operands are bf16 on the MXU.
    ref = jnp.einsum("btd,vd->btv", decoder_output, lm_head_weight)
    max_err = float(jnp.max(jnp.abs(logits - ref)))
    assert jnp.allclose(logits, ref, atol=2e-2, rtol=2e-2), max_err

    print("KERNEL_OK")
</pallas_src>

<mosaic_0001>
module attributes {stable_mosaic.version = 11 : i64} {
  func.func @lm_head_kernel(%arg0: i32, %arg1: i32, %arg2: memref<16x32xbf16, #tpu.memory_space<vmem>>, %arg3: memref<32x256xbf16, #tpu.memory_space<vmem>>, %arg4: memref<16x256xf32, #tpu.memory_space<vmem>>) attributes {dimension_semantics = [#tpu.dimension_semantics<parallel>, #tpu.dimension_semantics<parallel>], iteration_bounds = array<i64: 1, 1>, scalar_prefetch = 0 : i64, scratch_operands = 0 : i64, tpu.core_type = #tpu.core_type<tc>, window_params = [{transform_indices = @transform_0, window_bounds = array<i64: 16, 32>}, {transform_indices = @transform_1, window_bounds = array<i64: 32, 256>}, {transform_indices = @transform_2, window_bounds = array<i64: 16, 256>}]} {
    %c0 = arith.constant 0 : index
    %c0_0 = arith.constant 0 : index
    %0 = vector.load %arg2[%c0, %c0_0] : memref<16x32xbf16, #tpu.memory_space<vmem>>, vector<16x32xbf16>
    %c0_1 = arith.constant 0 : index
    %c0_2 = arith.constant 0 : index
    %1 = vector.load %arg3[%c0_1, %c0_2] : memref<32x256xbf16, #tpu.memory_space<vmem>>, vector<32x256xbf16>
    %cst = arith.constant dense<0.000000e+00> : vector<16x256xf32>
    %2 = tpu.matmul %0, %1, %cst {dimension_numbers = #tpu.dot_dimension_numbers<[1], [0], [0], [1], [0, 0, 1, 1], [], []>} : vector<16x32xbf16>, vector<32x256xbf16>, vector<16x256xf32> -> vector<16x256xf32>
    %c0_3 = arith.constant 0 : index
    %c0_4 = arith.constant 0 : index
    %3 = vector.load %arg4[%c0_3, %c0_4] : memref<16x256xf32, #tpu.memory_space<vmem>>, vector<16x256xf32>
    tpu.vector_store %arg4[%c0_3, %c0_4], %2 {strides = array<i32>} : memref<16x256xf32, #tpu.memory_space<vmem>>, vector<16x256xf32>,
    return
  }
  func.func @transform_0(%arg0: i32, %arg1: i32) -> (i32, i32) {
    %c0_i32 = arith.constant 0 : i32
    %c0_i32_0 = arith.constant 0 : i32
    return %arg1, %c0_i32 : i32, i32
  }
  func.func @transform_1(%arg0: i32, %arg1: i32) -> (i32, i32) {
    %c0_i32 = arith.constant 0 : i32
    %c0_i32_0 = arith.constant 0 : i32
    return %c0_i32, %arg0 : i32, i32
  }
  func.func @transform_2(%arg0: i32, %arg1: i32) -> (i32, i32) {
    %c0_i32 = arith.constant 0 : i32
    return %arg1, %arg0 : i32, i32
  }
}

</mosaic_0001>

<bundles_post_ra>
// kernel: tpu_custom_call.1
= control target key start
LH: loop header
LB: loop body
LE: loop exit
PB: predicated region body
PF: predicated region fallthrough
CT: control target
= control target key end

     0   :  { %7 = vsyncpa [#allocation3], 0  ;;  %s297_s0 = inlined_call_operand.hbm [shape: bf16[16,32], index: 0, kind: input, shape index: {}]   ;;  %s298_s1 = inlined_call_operand.hbm [shape: bf16[32,256], index: 1, kind: input, shape index: {}]   ;;  %s299_s2 = inlined_call_operand.hbm [shape: f32[16,256], index: 2, kind: output, shape index: {}]  }
   0x1   :  { %8 = vsyncpa [#allocation6], 0 }
   0x2   :  { %9 = vsyncpa [#allocation4], 0  ;;  %s236_s9 = smov [#allocation2]   ;;  %s164_s13 = scalar_lea.hbm %s297_s0, 128 }
   0x3   :  { %s15_s10 = sshll.u32 %s236_s9, 4  ;;  %p165_p0 = scmp.ne.s32.totalorder %s297_s0, %s164_s13  ;;  %s16_s10 = int_to_ptr.vmem [resolvable:$true] %s15_s10 }
   0x4   :  { %p168_p1 = scmp.lt.u32.totalorder %s164_s13, %s297_s0 }
   0x6   :  { %p170_p2 = pnand %p168_p1, %p165_p0 }
   0x8   :  { %173 = shalt.err (!%p170_p2)
}
   0x9   :  { %s174_s18 = scalar_lea.vmem %s16_s10, 128  ;;  %p179_p4 = scmp.lt.s32.totalorder %s16_s10, %s16_s10 }
   0xa   :  { %p175_p3 = scmp.ne.s32.totalorder %s16_s10, %s174_s18  ;;  %p180_p5 = scmp.lt.s32.totalorder %s174_s18, %s174_s18 }
   0xc   :  { %p181_p6 = por %p180_p5, %p179_p4 }
   0xe   :  { %p182_p7 = pnand %p181_p6, %p175_p3 }
  0x10   :  { %185 = shalt.err (!%p182_p7)
}
  0x11   :  { %s237_s19 = smov 64   ;;  %s238_s20 = smov 4  }
  0x12   :  { %21 = dma.hbm_to_vmem [thread:$0]  %s297_s0, 128, %s16_s10, [#allocation3], %s237_s19, %s237_s19, %s238_s20  }
  0x13   :  { %s239_s23 = smov [#allocation5]   ;;  %s186_s27 = scalar_lea.hbm %s298_s1, 512 }
  0x14   :  { %s27_s24 = sshll.u32 %s239_s23, 4  ;;  %p187_p8 = scmp.ne.s32.totalorder %s298_s1, %s186_s27  ;;  %s28_s24 = int_to_ptr.vmem [resolvable:$true] %s27_s24 }
  0x15   :  { %p190_p9 = scmp.lt.u32.totalorder %s186_s27, %s298_s1 }
  0x17   :  { %p192_p10 = pnand %p190_p9, %p187_p8 }
  0x19   :  { %195 = shalt.err (!%p192_p10)
}
  0x1a   :  { %s196_s4 = scalar_lea.vmem %s28_s24, 512  ;;  %p201_p12 = scmp.lt.s32.totalorder %s28_s24, %s28_s24 }
  0x1b   :  { %p197_p11 = scmp.ne.s32.totalorder %s28_s24, %s196_s4  ;;  %p202_p13 = scmp.lt.s32.totalorder %s196_s4, %s196_s4 }
  0x1d   :  { %p203_p0 = por %p202_p13, %p201_p12 }
  0x1f   :  { %p204_p1 = pnand %p203_p0, %p197_p11 }
  0x21   :  { %207 = shalt.err (!%p204_p1)
}
  0x22   :  { %s240_s0 = smov 128   ;;  %s241_s5 = smov 8  }
  0x23   :  { %33 = dma.hbm_to_vmem [thread:$0]  %s298_s1, 512, %s28_s24, [#allocation6], %s240_s0, %s240_s0, %s241_s5  }
  0x24   :  { %230 = dma.done.wait [#allocation3], 128  }
  0x25   :  { %231 = vsyncadd [#allocation3], 4294967168 }
  0x26   :  { %232 = dma.done.wait [#allocation6], 512  }
  0x27   :  { %233 = vsyncadd [#allocation6], 4294966784  ;;  %v242_v0 = vmov 0   ;;  %v157_v1 = vld [vmem:[#allocation5 + $0x4] ss:$8 sps:$4 sm:$0xff]   ;;  %v163_v5 = vld [vmem:[#allocation2] sm:$0xff]  }
  0x28   :  { %108 = vmatprep.mubr.bf16.mxu0 %v242_v0  ;;  %v159_v2 = vld [vmem:[#allocation5] ss:$8 sps:$4 sm:$0xff]   ;;  %76 = vmatprep.subr.bf16.mxu0 %v157_v1  ;;  %v160_v3 = vld [vmem:[#allocation5 + $0x14] ss:$8 sps:$4 sm:$0xff]   ;;  %v162_v4 = vld [vmem:[#allocation5 + $0x10] ss:$8 sps:$4 sm:$0xff]  }
  0x29   :  { %77 = vmatpush1.bf16.msra.mxu0 %v159_v2  ;;  %vm72_vm0 = vcmask 261120   ;;  %s243_s8 = smov [#allocation7]  }
  0x2a   :  { %78 = vmatprep.subr.bf16.mxu0 %v160_v3  ;;  %s128_s9 = sshll.u32 %s243_s8, 4  ;;  %s129_s9 = int_to_ptr.vmem [resolvable:$true] %s128_s9 }
  0x2b   :  { %s208_s1 = scalar_lea.vmem %s129_s9, 512  ;;  %p213_p3 = scmp.lt.s32.totalorder %s129_s9, %s129_s9 }
  0x2c   :  { %p209_p2 = scmp.ne.s32.totalorder %s129_s9, %s208_s1  ;;  %p214_p4 = scmp.lt.s32.totalorder %s208_s1, %s208_s1 }
  0x2d   :  { %79 = vmatpush1.bf16.msra.mxu0 %v162_v4 }
  0x2e   :  { %p215_p5 = por %p214_p4, %p213_p3 }
  0x30   :  { %146 = vmatmul.mubr.msk.bf16.vlgmr.msra.gmra.mrb[0].mxu0 %vm72_vm0, %v163_v5  ;;  %p216_p6 = pnand %p215_p5, %p209_p2 }
 0x103   :  { %v110_v6 = vpop.f32.mrb[0].mxu0 }
 0x104   :  { %119 = vst [vmem:[#allocation7] sm:$0xff] %v110_v6  ;;  %v112_v7 = vpop.f32.mrb[1].mxu0 }
 0x105   :  { %120 = vst [vmem:[#allocation7 + $0x8] sm:$0xff] %v112_v7  ;;  %v114_v8 = vpop.f32.mrb[2].mxu0 }
 0x106   :  { %121 = vst [vmem:[#allocation7 + $0x10] sm:$0xff] %v114_v8  ;;  %v116_v9 = vpop.f32.mrb[3].mxu0 }
 0x107   :  { %122 = vst [vmem:[#allocation7 + $0x18] sm:$0xff] %v116_v9 }
 0x108   :  { %219 = shalt.err (!%p216_p6)
}
 0x109   :  { %s220_s12 = scalar_lea.hbm %s299_s2, 512 }
 0x10a   :  { %p221_p7 = scmp.ne.s32.totalorder %s299_s2, %s220_s12  ;;  %p224_p8 = scmp.lt.u32.totalorder %s220_s12, %s299_s2 }
 0x10c   :  { %p226_p9 = pnand %p224_p8, %p221_p7 }
 0x10e   :  { %229 = shalt.err (!%p226_p9)
}
 0x10f   :  { %s244_s17 = smov 256   ;;  %s245_s18 = smov 16  }
 0x110   :  { %134 = dma.vmem_to_hbm [thread:$0]  %s129_s9, 512, %s299_s2, [#allocation4], %s244_s17, %s244_s17, %s245_s18  }
 0x111   :  { %234 = dma.done.wait [#allocation4], 512  }
 0x112   :  { %235 = vsyncadd [#allocation4], 4294966784 }
 0x113   :  { %138 = vsyncpa [#allocation3], 1 }
 0x114   :  { %139 = vsyncpa [#allocation6], 1 }
 0x115   :  { %140 = vsyncpa [#allocation4], 1 }

</bundles_post_ra>
